<compile_context>
chip_gen: v6e
topology: v6e:2x2x1
jax: 0.10.0
libtpu: 0.0.40
codegen_flags: <defaults>
</compile_context>

<pallas_src>
import functools

import jax
import jax.numpy as jnp
from jax.experimental import pallas as pl
from jax.experimental.pallas import tpu as pltpu

_EPS = 1e-5


# ---------------------------------------------------------------------------
# Generation-aware budgets.
# ---------------------------------------------------------------------------
@functools.lru_cache(maxsize=None)
def _physical_vmem_bytes():
    try:
        cap = int(getattr(pltpu.get_tpu_info(), "vmem_capacity_bytes"))
        if cap > 0:
            return cap
    except Exception:
        pass
    return 64 * 1024 * 1024  # conservative default (v7x)


@functools.lru_cache(maxsize=None)
def _budgets():
    phys = _physical_vmem_bytes()
    # ~62% of physical VMEM as the scoped limit: 40 MiB on v7x, 80 MiB on v5e/v6e.
    vmem_limit = min(phys * 5 // 8, 96 * 1024 * 1024)
    # Per-tile byte target for row-tiled passes: 4 MiB (v7x) / 8 MiB (v5e, v6e).
    tile_target = 4 * 1024 * 1024 if phys <= 64 * 1024 * 1024 else 8 * 1024 * 1024
    # Fused-path buffer budget (2 in-bufs + 2 out-bufs + f32 temps per strip):
    # ~24 MiB on v7x, ~48 MiB on v5e/v6e.
    fused_budget = vmem_limit * 3 // 5
    return vmem_limit, tile_target, fused_budget


def _row_tile(n, d, itemsize, target_bytes):
    """Largest row tile (multiple of 8) targeting ~target_bytes per input tile."""
    if n <= 8:
        return n
    rows = max(8, target_bytes // max(1, d * itemsize))
    rows -= rows % 8
    return int(min(n, rows))


# ---------------------------------------------------------------------------
# BatchNorm1d (training mode, gamma=1 / beta=0).
# ---------------------------------------------------------------------------
def _bn_fused_kernel(x_ref, o_ref):
    # Entire batch (N rows) of one feature strip is resident: centered stats + apply.
    x = x_ref[...].astype(jnp.float32)                       # [N, tile_d]
    mean = jnp.mean(x, axis=0, keepdims=True)
    centered = x - mean
    var = jnp.mean(centered * centered, axis=0, keepdims=True)  # biased variance
    o_ref[...] = (centered * jax.lax.rsqrt(var + _EPS)).astype(o_ref.dtype)


def _bn_stats_kernel(x_ref, scale_ref, shift_ref, acc_s, acc_q,
                     *, n_rows, tile_n, ragged):
    k = pl.program_id(1)                 # batch (reduction) axis, innermost in grid
    last = pl.num_programs(1) - 1
    grouped = (tile_n >= 8) and (tile_n % 8 == 0)

    @pl.when(k == 0)
    def _():
        acc_s[...] = jnp.zeros_like(acc_s)
        acc_q[...] = jnp.zeros_like(acc_q)

    x = x_ref[...].astype(jnp.float32)                       # [tile_n, tile_d]

    def _accum(xv):
        if grouped:
            # Sum groups of full vregs (VALU adds); defer the cross-sublane (XLU)
            # reduce to the finalize step.
            xg = xv.reshape(tile_n // 8, 8, xv.shape[-1])
            acc_s[...] += jnp.sum(xg, axis=0)
            acc_q[...] += jnp.sum(xg * xg, axis=0)
        else:
            acc_s[0:1, :] += jnp.sum(xv, axis=0, keepdims=True)
            acc_q[0:1, :] += jnp.sum(xv * xv, axis=0, keepdims=True)

    if ragged:
        # Pay the iota/compare/select mask only on the single edge tile.
        @pl.when(k != last)
        def _():
            _accum(x)

        @pl.when(k == last)
        def _():
            row = k * tile_n + jax.lax.broadcasted_iota(jnp.int32, x.shape, 0)
            _accum(jnp.where(row < n_rows, x, 0.0))
    else:
        _accum(x)

    @pl.when(k == last)
    def _():
        inv_n = jnp.float32(1.0 / n_rows)
        s = jnp.sum(acc_s[...], axis=0, keepdims=True)
        q = jnp.sum(acc_q[...], axis=0, keepdims=True)
        mean = s * inv_n
        var = jnp.maximum(q * inv_n - mean * mean, 0.0)      # biased variance
        scale = jax.lax.rsqrt(var + _EPS)
        scale_ref[...] = scale
        shift_ref[...] = -mean * scale


def _bn_apply_kernel(x_ref, scale_ref, shift_ref, o_ref):
    x = x_ref[...].astype(jnp.float32)
    o_ref[...] = (x * scale_ref[...] + shift_ref[...]).astype(o_ref.dtype)


def _batchnorm(x, *, fused=None, tile_n=None, tile_d=None, inplace=False):
    n, d = x.shape
    vmem_limit, tile_target, fused_budget = _budgets()
    itemsize = x.dtype.itemsize

    # Fused-path VMEM cost per feature column: 2 in-bufs + 2 out-bufs (input dtype)
    # plus ~2 f32-wide temporaries for the resident compute.
    col_bytes = n * (4 * itemsize + 8)
    min_strip = min(d, 128)
    if fused is None:
        fused = col_bytes * min_strip <= fused_budget

    if fused:
        # ---- single pass: grid over feature strips, whole batch resident ----
        if tile_d is not None:
            td = tile_d
        elif d <= 128:
            td = d
        else:
            td = min(d, max(128, (fused_budget // col_bytes) // 128 * 128))
            if td >= d and d >= 256:
                # Split into >=2 feature blocks so a 'parallel' axis exists for the
                # v7x megacore (one extra ~0.35us step on single-TC chips).
                td = ((pl.cdiv(d, 2) + 127) // 128) * 128
        d_tiles = pl.cdiv(d, td)
        return pl.pallas_call(
            _bn_fused_kernel,
            out_shape=jax.ShapeDtypeStruct((n, d), x.dtype),
            grid=(d_tiles,),
            in_specs=[pl.BlockSpec((n, td), lambda j: (0, j))],
            out_specs=pl.BlockSpec((n, td), lambda j: (0, j)),
            input_output_aliases=({0: 0} if inplace else {}),
            compiler_params=pltpu.CompilerParams(
                dimension_semantics=("parallel",),
                vmem_limit_bytes=vmem_limit),
        )(x)

    # ---- two-pass fallback for very large N*D ----
    td = tile_d or (d if d <= 2048 else 2048)   # long contiguous HBM row runs
    tn = tile_n or _row_tile(n, td, itemsize, tile_target)
    d_tiles = pl.cdiv(d, td)
    n_tiles = pl.cdiv(n, tn)
    ragged = (n % tn) != 0

    stats_kernel = functools.partial(
        _bn_stats_kernel, n_rows=n, tile_n=tn, ragged=ragged)

    scale, shift = pl.pallas_call(
        stats_kernel,
        out_shape=(jax.ShapeDtypeStruct((1, d), jnp.float32),
                   jax.ShapeDtypeStruct((1, d), jnp.float32)),
        grid=(d_tiles, n_tiles),
        in_specs=[pl.BlockSpec((tn, td), lambda j, k: (k, j))],
        out_specs=[pl.BlockSpec((1, td), lambda j, k: (0, j)),
                   pl.BlockSpec((1, td), lambda j, k: (0, j))],
        scratch_shapes=[pltpu.VMEM((8, td), jnp.float32),
                        pltpu.VMEM((8, td), jnp.float32)],
        compiler_params=pltpu.CompilerParams(
            dimension_semantics=("parallel", "arbitrary"),
            vmem_limit_bytes=vmem_limit),
    )(x)

    return pl.pallas_call(
        _bn_apply_kernel,
        out_shape=jax.ShapeDtypeStruct((n, d), x.dtype),
        grid=(n_tiles, d_tiles),
        in_specs=[pl.BlockSpec((tn, td), lambda i, j: (i, j)),
                  pl.BlockSpec((1, td), lambda i, j: (0, j)),
                  pl.BlockSpec((1, td), lambda i, j: (0, j))],
        out_specs=pl.BlockSpec((tn, td), lambda i, j: (i, j)),
        input_output_aliases=({0: 0} if inplace else {}),
        compiler_params=pltpu.CompilerParams(
            dimension_semantics=("parallel", "parallel"),
            vmem_limit_bytes=vmem_limit),
    )(x, scale, shift)


# ---------------------------------------------------------------------------
# LayerNorm (gamma=1 / beta=0): per-row normalization, row tiles x full D.
# ---------------------------------------------------------------------------
def _ln_kernel(x_ref, o_ref):
    x = x_ref[...].astype(jnp.float32)                       # [tile_n, D]
    mean = jnp.mean(x, axis=-1, keepdims=True)
    centered = x - mean
    var = jnp.mean(centered * centered, axis=-1, keepdims=True)
    o_ref[...] = (centered * jax.lax.rsqrt(var + _EPS)).astype(o_ref.dtype)


def _layernorm(x, *, tile_n=None):
    n, d = x.shape
    vmem_limit, tile_target, _ = _budgets()
    tn = tile_n or _row_tile(n, d, x.dtype.itemsize, tile_target)
    if tile_n is None and tn >= n and n >= 16:
        # Ensure >=2 blocks on the single 'parallel' axis (v7x megacore).
        tn = ((pl.cdiv(n, 2) + 7) // 8) * 8
    n_tiles = pl.cdiv(n, tn)
    return pl.pallas_call(
        _ln_kernel,
        out_shape=jax.ShapeDtypeStruct((n, d), x.dtype),
        grid=(n_tiles,),
        in_specs=[pl.BlockSpec((tn, d), lambda i: (i, 0))],
        out_specs=pl.BlockSpec((tn, d), lambda i: (i, 0)),
        compiler_params=pltpu.CompilerParams(
            dimension_semantics=("parallel",),
            vmem_limit_bytes=vmem_limit),
    )(x)


class Normalize:
    """JAX/Pallas port of subgcon.ssl.Normalize.

    'batchnorm'/'batch' -> BatchNorm1d(dim) in training mode (batch statistics,
        biased variance, eps=1e-5, gamma=1, beta=0; running stats not tracked).
    'layernorm'/'layer' -> LayerNorm(dim) (gamma=1, beta=0).
    norm=None / 'none' / dim=None -> identity.
    """

    def __init__(self, dim=None, norm="batchnorm"):
        if norm is None or dim is None or (isinstance(norm, str) and norm.lower() == "none"):
            self._fn = lambda x: x
            return
        norm_l = norm.lower()
        if norm_l in ("batchnorm", "batch"):
            self._fn = _batchnorm
        elif norm_l in ("layernorm", "layer"):
            self._fn = _layernorm
        else:
            raise ValueError(f"unknown norm: {norm}")
        self.dim = dim

    def __call__(self, x):
        return self._fn(x)


if __name__ == "__main__":
    key = jax.random.PRNGKey(0)
    k1, k2 = jax.random.split(key)

    # --- Default module config at small shapes: Normalize(hidden, 'batchnorm') ---
    batch, hidden = 8, 128
    x = jax.random.normal(k1, (batch, hidden), dtype=jnp.float32) * 2.0 + 0.5

    y_bn = jax.block_until_ready(Normalize(dim=hidden, norm="batchnorm")(x))
    mean = jnp.mean(x, axis=0, keepdims=True)
    var = jnp.mean((x - mean) ** 2, axis=0, keepdims=True)
    ref_bn = (x - mean) / jnp.sqrt(var + _EPS)
    assert jnp.allclose(y_bn, ref_bn, atol=5e-5, rtol=5e-5)

    y_ln = jax.block_until_ready(Normalize(dim=hidden, norm="layernorm")(x))
    mean_r = jnp.mean(x, axis=-1, keepdims=True)
    var_r = jnp.mean((x - mean_r) ** 2, axis=-1, keepdims=True)
    ref_ln = (x - mean_r) / jnp.sqrt(var_r + _EPS)
    assert jnp.allclose(y_ln, ref_ln, atol=5e-5, rtol=5e-5)

    # Identity path (norm=None / dim=None), as in the PyTorch module.
    assert jnp.allclose(Normalize(dim=None, norm=None)(x), x)

    # --- Exercise the fused multi-strip, two-pass ragged, and split-LN paths ---
    n2, d2 = 50, 256
    x2 = jax.random.normal(k2, (n2, d2), dtype=jnp.float32) * 3.0 - 1.0
    m2 = jnp.mean(x2, axis=0, keepdims=True)
    v2 = jnp.mean((x2 - m2) ** 2, axis=0, keepdims=True)
    ref2 = (x2 - m2) / jnp.sqrt(v2 + _EPS)

    # Fused single-pass BN, auto-split into two 128-wide feature strips.
    y2_fused = jax.block_until_ready(_batchnorm(x2))
    assert jnp.allclose(y2_fused, ref2, atol=5e-5, rtol=5e-5)

    # Two-pass fallback with a ragged reduction edge (50 % 16 != 0).
    y2_twopass = jax.block_until_ready(_batchnorm(x2, fused=False, tile_n=16))
    assert jnp.allclose(y2_twopass, ref2, atol=5e-5, rtol=5e-5)

    # LayerNorm with the row axis split into two blocks (32 + ragged 18).
    y3 = jax.block_until_ready(_layernorm(x2))
    m3 = jnp.mean(x2, axis=-1, keepdims=True)
    v3 = jnp.mean((x2 - m3) ** 2, axis=-1, keepdims=True)
    assert jnp.allclose(y3, (x2 - m3) / jnp.sqrt(v3 + _EPS), atol=5e-5, rtol=5e-5)

    print("KERNEL_OK")
</pallas_src>

<mosaic_0001>
module attributes {stable_mosaic.version = 11 : i64} {
  func.func @_bn_fused_kernel(%arg0: i32, %arg1: memref<8x128xf32, #tpu.memory_space<vmem>>, %arg2: memref<8x128xf32, #tpu.memory_space<vmem>>) attributes {dimension_semantics = [#tpu.dimension_semantics<parallel>], iteration_bounds = array<i64: 1>, scalar_prefetch = 0 : i64, scratch_operands = 0 : i64, tpu.core_type = #tpu.core_type<tc>, window_params = [{transform_indices = @transform_0, window_bounds = array<i64: 8, 128>}, {transform_indices = @transform_1, window_bounds = array<i64: 8, 128>}]} {
    %c0 = arith.constant 0 : index
    %c0_0 = arith.constant 0 : index
    %0 = vector.load %arg1[%c0, %c0_0] : memref<8x128xf32, #tpu.memory_space<vmem>>, vector<8x128xf32>
    %cst = arith.constant dense<0.000000e+00> : vector<128xf32>
    %1 = vector.multi_reduction <add>, %0, %cst [0] : vector<8x128xf32> to vector<128xf32>
    %2 = vector.shape_cast %1 : vector<128xf32> to vector<1x128xf32>
    %cst_1 = arith.constant 8.000000e+00 : f32
    %3 = vector.broadcast %cst_1 : f32 to vector<1x128xf32>
    %4 = arith.divf %2, %3 : vector<1x128xf32>
    %5 = vector.broadcast %4 : vector<1x128xf32> to vector<8x128xf32>
    %6 = arith.subf %0, %5 : vector<8x128xf32>
    %7 = arith.mulf %6, %6 : vector<8x128xf32>
    %cst_2 = arith.constant dense<0.000000e+00> : vector<128xf32>
    %8 = vector.multi_reduction <add>, %7, %cst_2 [0] : vector<8x128xf32> to vector<128xf32>
    %9 = vector.shape_cast %8 : vector<128xf32> to vector<1x128xf32>
    %cst_3 = arith.constant 8.000000e+00 : f32
    %10 = vector.broadcast %cst_3 : f32 to vector<1x128xf32>
    %11 = arith.divf %9, %10 : vector<1x128xf32>
    %cst_4 = arith.constant 9.99999974E-6 : f32
    %12 = vector.broadcast %cst_4 : f32 to vector<1x128xf32>
    %13 = arith.addf %11, %12 : vector<1x128xf32>
    %14 = math.rsqrt %13 : vector<1x128xf32>
    %15 = vector.broadcast %14 : vector<1x128xf32> to vector<8x128xf32>
    %16 = arith.mulf %6, %15 : vector<8x128xf32>
    %c0_5 = arith.constant 0 : index
    %c0_6 = arith.constant 0 : index
    %17 = vector.load %arg2[%c0_5, %c0_6] : memref<8x128xf32, #tpu.memory_space<vmem>>, vector<8x128xf32>
    tpu.vector_store %arg2[%c0_5, %c0_6], %16 {strides = array<i32>} : memref<8x128xf32, #tpu.memory_space<vmem>>, vector<8x128xf32>,
    return
  }
  func.func @transform_0(%arg0: i32) -> (i32, i32) {
    %c0_i32 = arith.constant 0 : i32
    %c0_i32_0 = arith.constant 0 : i32
    return %c0_i32, %arg0 : i32, i32
  }
  func.func @transform_1(%arg0: i32) -> (i32, i32) {
    %c0_i32 = arith.constant 0 : i32
    %c0_i32_0 = arith.constant 0 : i32
    return %c0_i32, %arg0 : i32, i32
  }
}

</mosaic_0001>

<bundles_post_ra>
// kernel: tpu_custom_call.1
= control target key start
LH: loop header
LB: loop body
LE: loop exit
PB: predicated region body
PF: predicated region fallthrough
CT: control target
= control target key end

     0   :  { %6 = vsyncpa [#allocation3], 0  ;;  %s124_s0 = inlined_call_operand.hbm [shape: f32[8,128], index: 0, kind: input, shape index: {}]   ;;  %s125_s1 = inlined_call_operand.hbm [shape: f32[8,128], index: 1, kind: output, shape index: {}]  }
   0x1   :  { %7 = vsyncpa [#allocation4], 0  ;;  %s106_s6 = smov [#allocation2]  }
   0x2   :  { %s14_s7 = sshll.u32 %s106_s6, 4  ;;  %s15_s7 = int_to_ptr.vmem [resolvable:$true] %s14_s7 }
   0x3   :  { %s70_s8 = scalar_lea.vmem %s15_s7, 128  ;;  %p75_p1 = scmp.lt.s32.totalorder %s15_s7, %s15_s7 }
   0x4   :  { %p71_p0 = scmp.ne.s32.totalorder %s15_s7, %s70_s8  ;;  %p76_p2 = scmp.lt.s32.totalorder %s70_s8, %s70_s8 }
   0x6   :  { %p77_p3 = por %p76_p2, %p75_p1 }
   0x8   :  { %p78_p4 = pnand %p77_p3, %p71_p0 }
   0xa   :  { %81 = shalt.err (!%p78_p4)
}
   0xb   :  { %17 = dma.hbm_to_vmem [thread:$0]  %s124_s0, 128, %s15_s7, [#allocation3]  }
   0xc   :  { %102 = dma.done.wait [#allocation3], 128  }
   0xd   :  { %103 = vsyncadd [#allocation3], 4294967168  ;;  %v21_v0 = vld [vmem:[#allocation2] sm:$0xff]  ;;  %s107_s0 = smov [#allocation5]  }
   0xe   :  { %v22_v1 = vrot.slane %v21_v0, 4  ;;  %s49_s11 = sshll.u32 %s107_s0, 4  ;;  %s50_s11 = int_to_ptr.vmem [resolvable:$true] %s49_s11 }
   0xf   :  { %s82_s12 = scalar_lea.vmem %s50_s11, 128  ;;  %p87_p6 = scmp.lt.s32.totalorder %s50_s11, %s50_s11 }
  0x10   :  { %v23_v2 = vadd.f32 %v22_v1, %v21_v0  ;;  %p83_p5 = scmp.ne.s32.totalorder %s50_s11, %s82_s12  ;;  %p88_p7 = scmp.lt.s32.totalorder %s82_s12, %s82_s12 }
  0x12   :  { %v24_v3 = vrot.slane %v23_v2, 2  ;;  %p89_p8 = por %p88_p7, %p87_p6 }
  0x14   :  { %v25_v4 = vadd.f32 %v24_v3, %v23_v2  ;;  %p90_p9 = pnand %p89_p8, %p83_p5 }
  0x16   :  { %v26_v5 = vrot.slane %v25_v4, 1 }
  0x18   :  { %v27_v6 = vadd.f32 %v26_v5, %v25_v4 }
  0x1a   :  { %v29_v7 = vmul.f32 0.125, %v27_v6 }
  0x1c   :  { %v30_v8 = vsub.f32 %v21_v0, %v29_v7 }
  0x1e   :  { %v31_v9 = vmul.f32 %v30_v8, %v30_v8 }
  0x20   :  { %v32_v10 = vrot.slane %v31_v9, 4 }
  0x22   :  { %v33_v11 = vadd.f32 %v32_v10, %v31_v9 }
  0x24   :  { %v34_v12 = vrot.slane %v33_v11, 2 }
  0x26   :  { %v35_v13 = vadd.f32 %v34_v12, %v33_v11 }
  0x28   :  { %v36_v14 = vrot.slane %v35_v13, 1 }
  0x2a   :  { %v37_v15 = vadd.f32 %v36_v14, %v35_v13 }
  0x2c   :  { %v38_v16 = vmul.f32 0.125, %v37_v15 }
  0x2e   :  { %v39_v17 = vadd.f32 1e-05, %v38_v16 }
  0x30   :  { %60 = vrsqrt.f32 %v39_v17 }
  0x3d   :  { %v61_v18 = vpop.eup %60 }
  0x3e   :  { %v41_v19 = vmul.f32 %v61_v18, %v30_v8 }
  0x40   :  { %42 = vst [vmem:[#allocation5] sm:$0xff] %v41_v19 }
  0x41   :  { %93 = shalt.err (!%p90_p9)
}
  0x42   :  { %52 = dma.vmem_to_hbm [thread:$0]  %s50_s11, 128, %s125_s1, [#allocation4]  }
  0x43   :  { %104 = dma.done.wait [#allocation4], 128  }
  0x44   :  { %105 = vsyncadd [#allocation4], 4294967168 }
  0x45   :  { %56 = vsyncpa [#allocation3], 1 }
  0x46   :  { %57 = vsyncpa [#allocation4], 1 }

</bundles_post_ra>
